<compile_context>
chip_gen: v5e
topology: v5e:2x2
jax: 0.10.0
libtpu: 0.0.40
codegen_flags: <defaults>
</compile_context>

<pallas_src>
import jax
import jax.numpy as jnp
from jax.experimental import pallas as pl
from jax.experimental.pallas import tpu as pltpu


# ----------------------------- kernel body ---------------------------------

def _se_kernel(x_ref, w1t_ref, b1_ref, w2t_ref, b2_ref, o_ref):
    # x_ref: (TB, C, HW) -- lane-dense: the flattened spatial axis is last.
    inv_hw = jnp.float32(1.0 / x_ref.shape[-1])

    # Pass 1 (squeeze): global average pool over the flattened spatial axis.
    # f32 accumulation; constant 1/HW folded instead of a per-row division.
    pooled = jnp.sum(x_ref[...].astype(jnp.float32), axis=-1) * inv_hw       # (TB, C)

    # Excitation, batched over all TB rows in this block. Tiny; hidden under
    # the DMA shadow of the two streaming passes.
    h = jnp.dot(pooled, w1t_ref[...],
                preferred_element_type=jnp.float32) + b1_ref[...]            # (TB, hidden)
    h = jnp.maximum(h, 0.0)
    s = jnp.dot(h, w2t_ref[...],
                preferred_element_type=jnp.float32) + b2_ref[...]            # (TB, C)
    s = jax.nn.sigmoid(s)                                                    # EUP

    # Pass 2 (scale): re-read x_ref (keeps the big block's live range short)
    # and scale in f32 so low-precision inputs aren't quantized by the gate.
    o_ref[...] = (x_ref[...].astype(jnp.float32) * s[:, :, None]).astype(o_ref.dtype)


# --------------------------- block-size policy ------------------------------

def _chip_config():
    """Per-generation block-size / VMEM policy (best-effort device query)."""
    kind = ""
    try:
        kind = jax.devices()[0].device_kind.lower()
    except Exception:
        pass
    if "v7" in kind:
        # 2 TensorCores/chip, 64 MiB physical VMEM per TC.
        return dict(target_block=6 << 20, base_vmem=40 << 20,
                    vmem_cap=56 << 20, num_cores=2)
    if "v6" in kind:
        # 1 TC, 128 MiB physical VMEM.
        return dict(target_block=8 << 20, base_vmem=64 << 20,
                    vmem_cap=112 << 20, num_cores=1)
    if "v5" in kind:
        # v5e: 1 TC, 128 MiB physical VMEM, 16 MiB default scoped.
        return dict(target_block=4 << 20, base_vmem=32 << 20,
                    vmem_cap=112 << 20, num_cores=1)
    # Unknown / conservative default.
    return dict(target_block=4 << 20, base_vmem=32 << 20,
                vmem_cap=56 << 20, num_cores=1)


def _pick_batch_block(batch, row_bytes, target_bytes, num_cores):
    """Pick TB (batch rows per grid step).

    - Aim for ~target_bytes per input block.
    - On 2-TC chips, keep >= 2 grid steps (and try for an even step count) so
      both TensorCores get work with dimension_semantics=("parallel",).
    - No divisibility requirement: the wrapper uses grid = cdiv(B, TB) and
      Pallas pads the ragged last block (OOB writes are dropped).
    """
    tb = max(1, min(batch, target_bytes // max(row_bytes, 1)))
    if num_cores >= 2 and batch >= 2:
        tb = max(1, min(tb, batch // 2))
        # Best-effort: make the step count a multiple of num_cores.
        for cand in range(tb, 0, -1):
            if pl.cdiv(batch, cand) % num_cores == 0:
                tb = cand
                break
    return tb


# ------------------------------- wrapper ------------------------------------

def se_layer(x, w1, b1, w2, b2):
    """SELayer forward.

    x : (B, C, H, W) float32
    w1: (C//r, C)    float32   (PyTorch Linear weight layout: (out, in))
    b1: (C//r,)      float32
    w2: (C, C//r)    float32
    b2: (C,)         float32
    """
    B, C, H, W = x.shape
    hidden = w1.shape[0]
    HW = H * W
    itemsize = x.dtype.itemsize

    cfg = _chip_config()
    row_bytes = C * HW * itemsize
    TB = _pick_batch_block(B, row_bytes, cfg["target_block"], cfg["num_cores"])
    block_bytes = TB * row_bytes

    weight_bytes = (C * hidden + hidden + hidden * C + C) * 4
    # in + out blocks, double-buffered, + weights + slack.
    vmem_needed = 4 * block_bytes + 2 * weight_bytes + (2 << 20)
    vmem_limit = min(max(cfg["base_vmem"], vmem_needed), cfg["vmem_cap"])

    if vmem_needed > cfg["vmem_cap"]:
        # Even a single batch row blows the VMEM budget on this generation.
        # TODO(synk): add a two-pass HW-tiled path (pool-accumulate over a
        # spatial grid axis with a scratch accumulator, then a scale pass).
        y = jnp.mean(x, axis=(2, 3))
        y = jnp.maximum(y @ w1.T + b1, 0.0)
        y = jax.nn.sigmoid(y @ w2.T + b2)
        return x * y[:, :, None, None]

    # Lane-dense layout: last dim is the flattened spatial axis.
    x_flat = x.reshape(B, C, HW)

    # Pre-transpose weights so the kernel does plain row-major matmuls.
    w1t = jnp.transpose(w1)            # (C, hidden)
    w2t = jnp.transpose(w2)            # (hidden, C)
    b1_2d = b1.reshape(1, hidden)
    b2_2d = b2.reshape(1, C)

    grid = (pl.cdiv(B, TB),)

    cost = pl.CostEstimate(
        flops=2 * B * C * HW + 4 * B * C * hidden + 2 * B * C,
        transcendentals=B * C,
        bytes_accessed=2 * B * C * HW * itemsize + weight_bytes,
    )

    out_flat = pl.pallas_call(
        _se_kernel,
        out_shape=jax.ShapeDtypeStruct((B, C, HW), x.dtype),
        grid=grid,
        in_specs=[
            pl.BlockSpec((TB, C, HW), lambda b: (b, 0, 0)),
            # Grid-invariant operands: constant block index -> fetched once.
            pl.BlockSpec((C, hidden), lambda b: (0, 0)),
            pl.BlockSpec((1, hidden), lambda b: (0, 0)),
            pl.BlockSpec((hidden, C), lambda b: (0, 0)),
            pl.BlockSpec((1, C), lambda b: (0, 0)),
        ],
        out_specs=pl.BlockSpec((TB, C, HW), lambda b: (b, 0, 0)),
        compiler_params=pltpu.CompilerParams(
            dimension_semantics=("parallel",),
            vmem_limit_bytes=int(vmem_limit),
        ),
        cost_estimate=cost,
    )(x_flat, w1t, b1_2d, w2t, b2_2d)

    return out_flat.reshape(B, C, H, W)


def se_layer_ref(x, w1, b1, w2, b2):
    """Pure-JAX reference matching the PyTorch forward."""
    y = jnp.mean(x, axis=(2, 3))                     # (B, C)
    y = jnp.maximum(y @ w1.T + b1, 0.0)              # (B, C//r)
    y = jax.nn.sigmoid(y @ w2.T + b2)                # (B, C)
    return x * y[:, :, None, None]


if __name__ == "__main__":
    # Small shapes consistent with SELayer(channel=16, reduction=8).
    B, C, H, W = 2, 16, 16, 16
    reduction = 8
    hidden = C // reduction

    key = jax.random.PRNGKey(0)
    kx, kw1, kb1, kw2, kb2 = jax.random.split(key, 5)

    x = jax.random.normal(kx, (B, C, H, W), dtype=jnp.float32)
    # PyTorch nn.Linear weight layout: (out_features, in_features)
    w1 = jax.random.normal(kw1, (hidden, C), dtype=jnp.float32) * 0.1
    b1 = jax.random.normal(kb1, (hidden,), dtype=jnp.float32) * 0.1
    w2 = jax.random.normal(kw2, (C, hidden), dtype=jnp.float32) * 0.1
    b2 = jax.random.normal(kb2, (C,), dtype=jnp.float32) * 0.1

    out = se_layer(x, w1, b1, w2, b2)
    out = jax.block_until_ready(out)

    ref = se_layer_ref(x, w1, b1, w2, b2)
    assert out.shape == (B, C, H, W)
    assert jnp.allclose(out, ref, atol=1e-5, rtol=1e-5), "mismatch vs reference"

    print("KERNEL_OK")
</pallas_src>

<mosaic_0001>
module attributes {stable_mosaic.version = 11 : i64} {
  func.func @_se_kernel(%arg0: i32, %arg1: memref<2x16x256xf32, #tpu.memory_space<vmem>>, %arg2: memref<16x2xf32, #tpu.memory_space<vmem>>, %arg3: memref<1x2xf32, #tpu.memory_space<vmem>>, %arg4: memref<2x16xf32, #tpu.memory_space<vmem>>, %arg5: memref<1x16xf32, #tpu.memory_space<vmem>>, %arg6: memref<2x16x256xf32, #tpu.memory_space<vmem>>) attributes {dimension_semantics = [#tpu.dimension_semantics<parallel>], iteration_bounds = array<i64: 1>, scalar_prefetch = 0 : i64, scratch_operands = 0 : i64, tpu.core_type = #tpu.core_type<tc>, window_params = [{transform_indices = @transform_0, window_bounds = array<i64: 2, 16, 256>}, {pipeline_mode = #tpu.pipeline_mode<synchronous>, transform_indices = @transform_1, window_bounds = array<i64: 16, 2>}, {pipeline_mode = #tpu.pipeline_mode<synchronous>, transform_indices = @transform_2, window_bounds = array<i64: 1, 2>}, {pipeline_mode = #tpu.pipeline_mode<synchronous>, transform_indices = @transform_3, window_bounds = array<i64: 2, 16>}, {pipeline_mode = #tpu.pipeline_mode<synchronous>, transform_indices = @transform_4, window_bounds = array<i64: 1, 16>}, {transform_indices = @transform_5, window_bounds = array<i64: 2, 16, 256>}]} {
    %c0 = arith.constant 0 : index
    %c0_0 = arith.constant 0 : index
    %c0_1 = arith.constant 0 : index
    %0 = vector.load %arg1[%c0, %c0_0, %c0_1] : memref<2x16x256xf32, #tpu.memory_space<vmem>>, vector<2x16x256xf32>
    %cst = arith.constant dense<0.000000e+00> : vector<2x16xf32>
    %1 = vector.multi_reduction <add>, %0, %cst [2] : vector<2x16x256xf32> to vector<2x16xf32>
    %cst_2 = arith.constant 3.906250e-03 : f32
    %2 = vector.broadcast %cst_2 : f32 to vector<2x16xf32>
    %3 = arith.mulf %1, %2 : vector<2x16xf32>
    %c0_3 = arith.constant 0 : index
    %c0_4 = arith.constant 0 : index
    %4 = vector.load %arg2[%c0_3, %c0_4] : memref<16x2xf32, #tpu.memory_space<vmem>>, vector<16x2xf32>
    %cst_5 = arith.constant dense<0.000000e+00> : vector<2x2xf32>
    %5 = tpu.matmul %3, %4, %cst_5 {dimension_numbers = #tpu.dot_dimension_numbers<[1], [0], [0], [1], [0, 0, 1, 1], [], []>} : vector<2x16xf32>, vector<16x2xf32>, vector<2x2xf32> -> vector<2x2xf32>
    %c0_6 = arith.constant 0 : index
    %c0_7 = arith.constant 0 : index
    %6 = vector.load %arg3[%c0_6, %c0_7] : memref<1x2xf32, #tpu.memory_space<vmem>>, vector<1x2xf32>
    %7 = vector.broadcast %6 : vector<1x2xf32> to vector<2x2xf32>
    %8 = arith.addf %5, %7 : vector<2x2xf32>
    %cst_8 = arith.constant 0.000000e+00 : f32
    %9 = vector.broadcast %cst_8 : f32 to vector<2x2xf32>
    %10 = arith.maximumf %8, %9 : vector<2x2xf32>
    %c0_9 = arith.constant 0 : index
    %c0_10 = arith.constant 0 : index
    %11 = vector.load %arg4[%c0_9, %c0_10] : memref<2x16xf32, #tpu.memory_space<vmem>>, vector<2x16xf32>
    %cst_11 = arith.constant dense<0.000000e+00> : vector<2x16xf32>
    %12 = tpu.matmul %10, %11, %cst_11 {dimension_numbers = #tpu.dot_dimension_numbers<[1], [0], [0], [1], [0, 0, 1, 1], [], []>} : vector<2x2xf32>, vector<2x16xf32>, vector<2x16xf32> -> vector<2x16xf32>
    %c0_12 = arith.constant 0 : index
    %c0_13 = arith.constant 0 : index
    %13 = vector.load %arg5[%c0_12, %c0_13] : memref<1x16xf32, #tpu.memory_space<vmem>>, vector<1x16xf32>
    %14 = vector.broadcast %13 : vector<1x16xf32> to vector<2x16xf32>
    %15 = arith.addf %12, %14 : vector<2x16xf32>
    %16 = arith.negf %15 : vector<2x16xf32>
    %17 = math.exp %16 : vector<2x16xf32>
    %cst_14 = arith.constant 1.000000e+00 : f32
    %18 = vector.broadcast %cst_14 : f32 to vector<2x16xf32>
    %19 = arith.addf %18, %17 : vector<2x16xf32>
    %20 = arith.divf %18, %19 : vector<2x16xf32>
    %c0_15 = arith.constant 0 : index
    %c0_16 = arith.constant 0 : index
    %c0_17 = arith.constant 0 : index
    %21 = vector.load %arg1[%c0_15, %c0_16, %c0_17] : memref<2x16x256xf32, #tpu.memory_space<vmem>>, vector<2x16x256xf32>
    %22 = vector.shape_cast %20 : vector<2x16xf32> to vector<2x16x1xf32>
    %23 = vector.broadcast %22 : vector<2x16x1xf32> to vector<2x16x256xf32>
    %24 = arith.mulf %21, %23 : vector<2x16x256xf32>
    %c0_18 = arith.constant 0 : index
    %c0_19 = arith.constant 0 : index
    %c0_20 = arith.constant 0 : index
    %25 = vector.load %arg6[%c0_18, %c0_19, %c0_20] : memref<2x16x256xf32, #tpu.memory_space<vmem>>, vector<2x16x256xf32>
    tpu.vector_store %arg6[%c0_18, %c0_19, %c0_20], %24 {strides = array<i32>} : memref<2x16x256xf32, #tpu.memory_space<vmem>>, vector<2x16x256xf32>,
    return
  }
  func.func @transform_0(%arg0: i32) -> (i32, i32, i32) {
    %c0_i32 = arith.constant 0 : i32
    %c0_i32_0 = arith.constant 0 : i32
    %c0_i32_1 = arith.constant 0 : i32
    return %arg0, %c0_i32, %c0_i32_0 : i32, i32, i32
  }
  func.func @transform_1(%arg0: i32) -> (i32, i32) {
    %c0_i32 = arith.constant 0 : i32
    %c0_i32_0 = arith.constant 0 : i32
    %c0_i32_1 = arith.constant 0 : i32
    return %c0_i32, %c0_i32_0 : i32, i32
  }
  func.func @transform_2(%arg0: i32) -> (i32, i32) {
    %c0_i32 = arith.constant 0 : i32
    %c0_i32_0 = arith.constant 0 : i32
    %c0_i32_1 = arith.constant 0 : i32
    return %c0_i32, %c0_i32_0 : i32, i32
  }
  func.func @transform_3(%arg0: i32) -> (i32, i32) {
    %c0_i32 = arith.constant 0 : i32
    %c0_i32_0 = arith.constant 0 : i32
    %c0_i32_1 = arith.constant 0 : i32
    return %c0_i32, %c0_i32_0 : i32, i32
  }
  func.func @transform_4(%arg0: i32) -> (i32, i32) {
    %c0_i32 = arith.constant 0 : i32
    %c0_i32_0 = arith.constant 0 : i32
    %c0_i32_1 = arith.constant 0 : i32
    return %c0_i32, %c0_i32_0 : i32, i32
  }
  func.func @transform_5(%arg0: i32) -> (i32, i32, i32) {
    %c0_i32 = arith.constant 0 : i32
    %c0_i32_0 = arith.constant 0 : i32
    %c0_i32_1 = arith.constant 0 : i32
    return %arg0, %c0_i32, %c0_i32_0 : i32, i32, i32
  }
}

</mosaic_0001>

<bundles_post_ra>
// kernel: tpu_custom_call.1
= control target key start
LH: loop header
LB: loop body
LE: loop exit
PB: predicated region body
PF: predicated region fallthrough
CT: control target
= control target key end

     0   :  { %10 = vsyncpa [#allocation3], 0  ;;  %s384_s0 = inlined_call_operand.hbm [shape: f32[2,16,256], index: 0, kind: input, shape index: {}]   ;;  %s385_s1 = inlined_call_operand.vmem [shape: f32[16,2], index: 1, kind: input, shape index: {}]   ;;  %s386_s2 = inlined_call_operand.vmem [shape: f32[1,2], index: 2, kind: input, shape index: {}]   ;;  %s387_s3 = inlined_call_operand.vmem [shape: f32[2,16], index: 3, kind: input, shape index: {}]   ;;  %s388_s4 = inlined_call_operand.vmem [shape: f32[1,16], index: 4, kind: input, shape index: {}]   ;;  %s389_s5 = inlined_call_operand.hbm [shape: f32[2,16,256], index: 5, kind: output, shape index: {}]  }
   0x1   :  { %11 = vsyncpa [#allocation4], 0  ;;  %s16_s20 = sshll.u32 %s384_s0, 4  ;;  %s291_s21 = smov [#allocation2]   ;;  %s17_s20 = int_to_ptr.hbm [resolvable:$true] %s16_s20 }
   0x2   :  { %s18_s22 = sshll.u32 %s291_s21, 4  ;;  %s292_s23 = smov 256   ;;  %s19_s22 = int_to_ptr.vmem [resolvable:$true] %s18_s22 }
   0x3   :  { %s293_s24 = smov 16  }
   0x4   :  { %24 = dma.hbm_to_vmem [thread:$0]  %s17_s20, 1024, %s19_s22, [#allocation3], %s292_s23, %s292_s23, %s293_s24  }
   0x5   :  { %287 = dma.done.wait [#allocation3], 1024  }
   0x6   :  { %288 = vsyncadd [#allocation3], 4294966272  ;;  %v331_v0 = vld [vmem:[#allocation2 + $0x20] sm:$0xff]  ;;  %v333_v1 = vld [vmem:[#allocation2 + $0x28] sm:$0xff]  ;;  %v71_v15 = vlaneseq  ;;  %vm76_vm0 = vcmask 130112   ;;  %vm81_vm1 = vcmask 1041409  }
   0x7   :  { %v335_v2 = vld [vmem:[#allocation2] sm:$0xff]  ;;  %v51_v3 = vadd.f32 %v333_v1, %v331_v0  ;;  %v339_v4 = vld [vmem:[#allocation2 + $0x8] sm:$0xff]  ;;  %v343_v6 = vld [vmem:[#allocation2 + $0x30] sm:$0xff]  ;;  %vm83_vm2 = vcmask 130048   ;;  %vm116_vm3 = vcmask 1041408   ;;  %vm112_vm4 = vcmask 15360  }
   0x8   :  { %v45_v5 = vadd.f32 %v339_v4, %v335_v2  ;;  %v345_v7 = vld [vmem:[#allocation2 + $0x38] sm:$0xff]  ;;  %v347_v8 = vld [vmem:[#allocation2 + $0x10] sm:$0xff]  ;;  %v62_v12 = vld [vmem:[%s385_s1 + $0x8] sm:$0xff]  ;;  %v72_v17 = vand.u32 127, %v71_v15  ;;  %v161_v37 = vshrl.u32 %v71_v15, 7  ;;  %s207_s9 = sshll.u32 %s389_s5, 4  ;;  %s208_s9 = int_to_ptr.hbm [resolvable:$true] %s207_s9 }
   0x9   :  { %52 = vadd.xlane.f32.xlu1 %v51_v3  ;;  %v349_v9 = vld [vmem:[#allocation2 + $0x18] sm:$0xff]  ;;  %v54_v10 = vadd.f32 %v345_v7, %v343_v6  ;;  %v61_v13 = vld [vmem:[%s385_s1] sm:$0xff]  ;;  %100 = vmatpush.msra.mxu0 %v62_v12 }
   0xa   :  { %46 = vadd.xlane.f32.xlu0 %v45_v5  ;;  %v48_v11 = vadd.f32 %v349_v9, %v347_v8  ;;  %v74_v19 = vadd.s32 4294967288, %v72_v17  ;;  %v107_v32 = vld [vmem:[%s387_s3] sm:$0x3]  ;;  %228 = vset.pattern.permute.xlu2 %v161_v37  ;;  %v168_v38 = vadd.s32 8, %v161_v37 }
   0xb   :  { %101 = vmatpush.msra.mxu0 %v61_v13  ;;  %221 = vmatpush.msk.msra.mxu1 %vm116_vm3, %v107_v32  ;;  %v233_v33 = vld [vmem:[%s386_s2] ss:$0 sm:$0xff]  ;;  %s294_s2 = smov [#allocation5]  }
   0xc   :  { %230 = vset.pattern.permute.xlu0 %v161_v37  ;;  %231 = vset.pattern.permute.xlu1 %v168_v38  ;;  %v234_v39 = vld [vmem:[%s388_s4] ss:$0 sm:$0xff]  ;;  %s205_s3 = sshll.u32 %s294_s2, 4  ;;  %s206_s3 = int_to_ptr.vmem [resolvable:$true] %s205_s3 }
  0x11   :  { %55 = vadd.xlane.f32.xlu1 %v54_v10 }
  0x12   :  { %49 = vadd.xlane.f32.xlu0 %v48_v11 }
  0x7c   :  { %v53_v14 = vpop.xlane.xlu1 %52 }
  0x7d   :  { %v47_v16 = vpop.xlane.xlu0 %46  ;;  %v59_v18 = vmul.f32 0.00390625, %v53_v14 }
  0x7e   :  { %v57_v20 = vmul.f32 0.00390625, %v47_v16 }
  0x7f   :  { %v78_v25 = vperm.slane %v59_v18, %v72_v17 }
  0x80   :  { %v73_v27 = vperm.slane %v57_v20, %v72_v17 }
  0x84   :  { %v56_v21 = vpop.xlane.xlu1 %55 }
  0x85   :  { %v60_v22 = vmul.f32 0.00390625, %v56_v21  ;;  %v50_v23 = vpop.xlane.xlu0 %49 }
  0x86   :  { %v58_v24 = vmul.f32 0.00390625, %v50_v23 }
  0x87   :  { %v79_v26 = vperm.slane %v60_v22, %v74_v19 }
  0x88   :  { %v75_v28 = vperm.slane %v58_v24, %v74_v19 }
  0x89   :  { %v80_v29 = vsel %vm76_vm0, %v79_v26, %v78_v25 }
  0x8a   :  { %v77_v30 = vsel %vm76_vm0, %v75_v28, %v73_v27 }
  0x8b   :  { %v82_v31 = vsel %vm81_vm1, %v80_v29, %v77_v30 }
  0x8c   :  { %220 = vmatmul.msk.f32.vlgmr.msra.gmra.mxu0 %vm83_vm2, %v82_v31 }
 0x109   :  { %v103_v34 = vpop.f32.mrf.mxu0 }
 0x10a   :  { %v104_v35 = vadd.f32 %v233_v33, %v103_v34 }
 0x10c   :  { %v106_v36 = vmax.f32 %v104_v35, 0.0 }
 0x10e   :  { %222 = vmatmul.msk.f32.vlgmr.msra.gmra.mxu1 %vm112_vm4, %v106_v36 }
 0x18b   :  { %v137_v40 = vpop.f32.mrf.mxu1 }
 0x18c   :  { %v138_v41 = vadd.f32 %v234_v39, %v137_v40 }
 0x18e   :  { %v223_v42 = vmul.f32 -1.442695, %v138_v41 }
 0x190   :  { %235 = vpow2.f32 %v223_v42 }
 0x196   :  { %v236_v43 = vpop.eup %235 }
 0x197   :  { %v143_v44 = vadd.f32 1.0, %v236_v43 }
 0x199   :  { %237 = vrcp.f32 %v143_v44  ;;  %v155_v48 = vand.u32 2147483648, %v143_v44  ;;  %v153_v50 = vand.u32 2147483647, %v143_v44  ;;  %vm149_vm6 = vweird.f32 %v143_v44 }
 0x19b   :  { %v156_v52 = vor.u32 1.1754944e-38, %v155_v48  ;;  %vm154_vm8 = vcmp.eq.f32.partialorder %v153_v50, 8.507059e+37 }
 0x19f   :  { %v238_v45 = vpop.eup %237 }
 0x1a0   :  { %v145_v46 = vmul.f32 %v238_v45, %v143_v44  ;;  %vm150_vm5 = vweird.f32 %v238_v45 }
 0x1a1   :  { %vm151_vm7 = vmor %vm149_vm6, %vm150_vm5 }
 0x1a2   :  { %v146_v47 = vsub.f32 1.0, %v145_v46 }
 0x1a4   :  { %v147_v49 = vmul.f32 %v238_v45, %v146_v47 }
 0x1a6   :  { %v148_v51 = vadd.f32 %v238_v45, %v147_v49 }
 0x1a8   :  { %v152_v53 = vsel %vm151_vm7, %v238_v45, %v148_v51 }
 0x1a9   :  { %v157_v54 = vsel %vm154_vm8, %v156_v52, %v152_v53 }
 0x1aa   :  { %v172_v55 = vperm.slane %v157_v54, 1  ;;  %v159_v56 = vperm.slane %v157_v54, 0 }
 0x1ac   :  { %183 = vperm.xlu1 %231, %v172_v55   ;;  %177 = vperm.xlu0 %230, %v172_v55  }
 0x1ad   :  { %164 = vperm.xlu2 %228, %v159_v56  }
 0x1b4   :  { %232 = vset.pattern.permute.xlu0 %v168_v38 }
 0x1b5   :  { %229 = vset.pattern.permute.xlu2 %v168_v38 }
 0x1bd   :  { %170 = vperm.xlu2 %229, %v159_v56  }
 0x207   :  { %v165_v57 = vpop.permute.xlu2 %164 }
 0x208   :  { %v185_v58 = vmul.f32 %v165_v57, %v335_v2  ;;  %v186_v59 = vmul.f32 %v165_v57, %v339_v4 }
 0x20a   :  { %193 = vst [vmem:[#allocation5] sm:$0xff] %v185_v58 }
 0x20b   :  { %194 = vst [vmem:[#allocation5 + $0x8] sm:$0xff] %v186_v59 }
 0x217   :  { %v171_v60 = vpop.permute.xlu2 %170 }
 0x218   :  { %v187_v61 = vmul.f32 %v171_v60, %v347_v8  ;;  %v188_v62 = vmul.f32 %v171_v60, %v349_v9 }
 0x21a   :  { %195 = vst [vmem:[#allocation5 + $0x10] sm:$0xff] %v187_v61 }
 0x21b   :  { %196 = vst [vmem:[#allocation5 + $0x18] sm:$0xff] %v188_v62 }
 0x21e   :  { %v184_v63 = vpop.permute.xlu1 %183  ;;  %v178_v3 = vpop.permute.xlu0 %177 }
 0x21f   :  { %v191_v5 = vmul.f32 %v184_v63, %v343_v6  ;;  %v192_v10 = vmul.f32 %v184_v63, %v345_v7  ;;  %v189_v11 = vmul.f32 %v178_v3, %v331_v0  ;;  %v190_v2 = vmul.f32 %v178_v3, %v333_v1 }
 0x221   :  { %199 = vst [vmem:[#allocation5 + $0x30] sm:$0xff] %v191_v5 }
 0x222   :  { %200 = vst [vmem:[#allocation5 + $0x38] sm:$0xff] %v192_v10 }
 0x223   :  { %197 = vst [vmem:[#allocation5 + $0x20] sm:$0xff] %v189_v11 }
 0x224   :  { %198 = vst [vmem:[#allocation5 + $0x28] sm:$0xff] %v190_v2 }
 0x225   :  { %213 = dma.vmem_to_hbm [thread:$0]  %s206_s3, 1024, %s208_s9, [#allocation4], %s292_s23, %s292_s23, %s293_s24  }
 0x226   :  { %289 = dma.done.wait [#allocation4], 1024  }
 0x227   :  { %290 = vsyncadd [#allocation4], 4294966272 }
 0x228   :  { %218 = vsyncpa [#allocation3], 1 }
 0x229   :  { %219 = vsyncpa [#allocation4], 1 }

</bundles_post_ra>
